<compile_context>
chip_gen: v6e
topology: v6e:2x2x1
jax: 0.10.0
libtpu: 0.0.40
codegen_flags: <defaults>
</compile_context>

<pallas_src>
import jax
import jax.numpy as jnp
from jax.experimental import pallas as pl
from jax.experimental.pallas import tpu as pltpu

_SQRT_HALF = 0.7071067811865476


def _gelu(x):
    # exact (erf) GELU, matching torch nn.GELU default
    return 0.5 * x * (1.0 + jax.lax.erf(x * _SQRT_HALF))


def _round_up(x, m):
    return ((x + m - 1) // m) * m


# --------------------------------------------------------------------------------------
# Fused HomMerge kernel: one batch tile per grid step, everything stays in VMEM.
# --------------------------------------------------------------------------------------
def _hommerge_kernel(vec_ref, w1_ref, w2_ref, lw_ref, lb_ref, emb_ref):
    x = vec_ref[...].astype(jnp.float32)               # (TB, vn, vd), f32 accumulation
    tb = x.shape[0]

    # Adaptive avg/max pool over the feature (last / lane) axis -> (TB, vn)
    avg = jnp.mean(x, axis=-1)
    mx = jnp.max(x, axis=-1)

    # Shared-weight fc applied to both pooled vectors: fuse the two branches into a
    # single matmul pair by stacking along the row axis (one MXU push instead of two).
    z = jnp.concatenate([avg, mx], axis=0)              # (2*TB, vn)
    h = jnp.maximum(
        jnp.dot(z, w1_ref[...].astype(jnp.float32), preferred_element_type=jnp.float32),
        0.0,
    )                                                    # (2*TB, vn//2)
    s = jnp.dot(h, w2_ref[...].astype(jnp.float32), preferred_element_type=jnp.float32)
    att = jax.nn.sigmoid(s[:tb] + s[tb:])                # (TB, vn)

    # out = squeeze(att @ vec, 1): VPU broadcast-mul + reduce over vn (no 1xN MXU work)
    pooled = jnp.sum(att[:, :, None] * x, axis=1)        # (TB, vd)

    # lin: Linear(vec_dim, emb_dim) + GELU (+ Dropout == identity at inference).
    # lw/lb are zero-padded to a lane-dense emb_pad; padded columns give gelu(0)=0.
    y = (
        jnp.dot(pooled, lw_ref[...].astype(jnp.float32), preferred_element_type=jnp.float32)
        + lb_ref[...].astype(jnp.float32)
    )
    emb_ref[...] = _gelu(y).astype(emb_ref.dtype)


def hommerge_pallas(vec, fc1_w, fc2_w, lin_w, lin_b, *, block_b=512):
    """Fused HomMerge forward.

    vec   : (B, vec_n, vec_dim)   -- any float dtype (bf16 recommended upstream)
    fc1_w : (vec_n, vec_n//2)     == Conv1d(vec_n, vec_n//2, 1).weight[:, :, 0].T
    fc2_w : (vec_n//2, vec_n)     == Conv1d(vec_n//2, vec_n, 1).weight[:, :, 0].T
    lin_w : (vec_dim, emb_dim)    == Linear(vec_dim, emb_dim).weight.T
    lin_b : (emb_dim,)
    returns emb : (B, emb_dim) float32
    """
    B, vec_n, vec_dim = vec.shape
    vn2 = fc1_w.shape[1]
    emb_dim = lin_w.shape[1]

    # ----- lane-dense output: pad emb_dim to a multiple of 128 for unmasked stores ----
    emb_pad = _round_up(max(emb_dim, 128), 128)
    if emb_pad != emb_dim:
        lin_w_p = jnp.zeros((vec_dim, emb_pad), lin_w.dtype).at[:, :emb_dim].set(lin_w)
        lin_b_p = jnp.zeros((emb_pad,), lin_b.dtype).at[:emb_dim].set(lin_b)
    else:
        lin_w_p, lin_b_p = lin_w, lin_b
    lin_b_p = lin_b_p.reshape(1, emb_pad)

    # ----- batch tiling: 8-row aligned tiles, pad B so the grid divides evenly --------
    # TB ~ 512 keeps the double-buffered vec tiles at a few MiB even with vec_dim<128
    # lane padding, comfortably inside scoped VMEM on v5e/v6e/v7x.
    tb = _round_up(min(block_b, _round_up(B, 8)), 8)
    b_pad = _round_up(B, tb)
    vec_p = vec if b_pad == B else jnp.pad(vec, ((0, b_pad - B), (0, 0), (0, 0)))

    grid = (b_pad // tb,)

    out = pl.pallas_call(
        _hommerge_kernel,
        out_shape=jax.ShapeDtypeStruct((b_pad, emb_pad), jnp.float32),
        grid_spec=pltpu.PrefetchScalarGridSpec(
            num_scalar_prefetch=0,
            grid=grid,
            in_specs=[
                pl.BlockSpec((tb, vec_n, vec_dim), lambda i: (i, 0, 0)),   # streamed
                pl.BlockSpec((vec_n, vn2), lambda i: (0, 0)),              # resident
                pl.BlockSpec((vn2, vec_n), lambda i: (0, 0)),              # resident
                pl.BlockSpec((vec_dim, emb_pad), lambda i: (0, 0)),        # resident
                pl.BlockSpec((1, emb_pad), lambda i: (0, 0)),              # resident
            ],
            out_specs=pl.BlockSpec((tb, emb_pad), lambda i: (i, 0)),
        ),
        compiler_params=pltpu.CompilerParams(
            dimension_semantics=("parallel",),   # shards batch tiles across v7x's 2 TCs
        ),
    )(vec_p, fc1_w, fc2_w, lin_w_p, lin_b_p)

    return out[:B, :emb_dim]
    # TODO(synk): nn.Dropout is a no-op at inference; training-mode dropout would need
    # pltpu.prng_seed + pltpu.prng_random_bits inside the kernel.


# --------------------------------------------------------------------------------------
# Pure-JAX reference (same math) for a correctness check.
# --------------------------------------------------------------------------------------
def hommerge_ref(vec, fc1_w, fc2_w, lin_w, lin_b):
    vec = vec.astype(jnp.float32)
    avg = jnp.mean(vec, axis=-1)
    mx = jnp.max(vec, axis=-1)

    def fc(z):
        return jnp.maximum(z @ fc1_w, 0.0) @ fc2_w

    att = jax.nn.sigmoid(fc(avg) + fc(mx))
    pooled = jnp.einsum("bn,bnd->bd", att, vec)
    y = pooled @ lin_w + lin_b
    return _gelu(y)


# --------------------------------------------------------------------------------------
# Driver
# --------------------------------------------------------------------------------------
if __name__ == "__main__":
    B, vec_n, vec_dim, emb_dim = 2, 8, 16, 32

    key = jax.random.PRNGKey(0)
    k1, k2, k3, k4, k5 = jax.random.split(key, 5)

    vec = jax.random.normal(k1, (B, vec_n, vec_dim), jnp.float32)
    fc1_w = 0.1 * jax.random.normal(k2, (vec_n, vec_n // 2), jnp.float32)
    fc2_w = 0.1 * jax.random.normal(k3, (vec_n // 2, vec_n), jnp.float32)
    lin_w = 0.1 * jax.random.normal(k4, (vec_dim, emb_dim), jnp.float32)
    lin_b = 0.1 * jax.random.normal(k5, (emb_dim,), jnp.float32)

    # f32 path: exact parity with the PyTorch reference math.
    emb = jax.jit(hommerge_pallas)(vec, fc1_w, fc2_w, lin_w, lin_b)
    jax.block_until_ready(emb)
    ref = hommerge_ref(vec, fc1_w, fc2_w, lin_w, lin_b)
    assert emb.shape == (B, emb_dim)
    assert jnp.allclose(emb, ref, atol=1e-4, rtol=1e-4), float(jnp.max(jnp.abs(emb - ref)))

    # bf16 input path: no wrapper-side f32 cast, f32 accumulation inside the kernel.
    emb_bf16 = jax.jit(hommerge_pallas)(vec.astype(jnp.bfloat16), fc1_w, fc2_w, lin_w, lin_b)
    jax.block_until_ready(emb_bf16)
    assert emb_bf16.shape == (B, emb_dim)
    assert jnp.allclose(emb_bf16, ref, atol=5e-2, rtol=5e-2), float(
        jnp.max(jnp.abs(emb_bf16 - ref))
    )

    print("KERNEL_OK")
</pallas_src>

<mosaic_0001>
module attributes {stable_mosaic.version = 11 : i64} {
  func.func @_hommerge_kernel(%arg0: i32, %arg1: memref<8x8x16xf32, #tpu.memory_space<vmem>>, %arg2: memref<8x4xf32, #tpu.memory_space<vmem>>, %arg3: memref<4x8xf32, #tpu.memory_space<vmem>>, %arg4: memref<16x128xf32, #tpu.memory_space<vmem>>, %arg5: memref<1x128xf32, #tpu.memory_space<vmem>>, %arg6: memref<8x128xf32, #tpu.memory_space<vmem>>) attributes {dimension_semantics = [#tpu.dimension_semantics<parallel>], iteration_bounds = array<i64: 1>, scalar_prefetch = 0 : i64, scratch_operands = 0 : i64, tpu.core_type = #tpu.core_type<tc>, window_params = [{transform_indices = @transform_0, window_bounds = array<i64: 8, 8, 16>}, {pipeline_mode = #tpu.pipeline_mode<synchronous>, transform_indices = @transform_1, window_bounds = array<i64: 8, 4>}, {pipeline_mode = #tpu.pipeline_mode<synchronous>, transform_indices = @transform_2, window_bounds = array<i64: 4, 8>}, {pipeline_mode = #tpu.pipeline_mode<synchronous>, transform_indices = @transform_3, window_bounds = array<i64: 16, 128>}, {pipeline_mode = #tpu.pipeline_mode<synchronous>, transform_indices = @transform_4, window_bounds = array<i64: 1, 128>}, {transform_indices = @transform_5, window_bounds = array<i64: 8, 128>}]} {
    %c0 = arith.constant 0 : index
    %c0_0 = arith.constant 0 : index
    %c0_1 = arith.constant 0 : index
    %0 = vector.load %arg1[%c0, %c0_0, %c0_1] : memref<8x8x16xf32, #tpu.memory_space<vmem>>, vector<8x8x16xf32>
    %cst = arith.constant dense<0.000000e+00> : vector<8x8xf32>
    %1 = vector.multi_reduction <add>, %0, %cst [2] : vector<8x8x16xf32> to vector<8x8xf32>
    %cst_2 = arith.constant 1.600000e+01 : f32
    %2 = vector.broadcast %cst_2 : f32 to vector<8x8xf32>
    %3 = arith.divf %1, %2 : vector<8x8xf32>
    %cst_3 = arith.constant dense<0xFF800000> : vector<8x8xf32>
    %4 = vector.multi_reduction <maximumf>, %0, %cst_3 [2] : vector<8x8x16xf32> to vector<8x8xf32>
    %5 = tpu.concatenate %3, %4 in 0 : vector<8x8xf32>, vector<8x8xf32> -> vector<16x8xf32>
    %c0_4 = arith.constant 0 : index
    %c0_5 = arith.constant 0 : index
    %6 = vector.load %arg2[%c0_4, %c0_5] : memref<8x4xf32, #tpu.memory_space<vmem>>, vector<8x4xf32>
    %cst_6 = arith.constant dense<0.000000e+00> : vector<16x4xf32>
    %7 = tpu.matmul %5, %6, %cst_6 {dimension_numbers = #tpu.dot_dimension_numbers<[1], [0], [0], [1], [0, 0, 1, 1], [], []>} : vector<16x8xf32>, vector<8x4xf32>, vector<16x4xf32> -> vector<16x4xf32>
    %cst_7 = arith.constant 0.000000e+00 : f32
    %8 = vector.broadcast %cst_7 : f32 to vector<16x4xf32>
    %9 = arith.maximumf %7, %8 : vector<16x4xf32>
    %c0_8 = arith.constant 0 : index
    %c0_9 = arith.constant 0 : index
    %10 = vector.load %arg3[%c0_8, %c0_9] : memref<4x8xf32, #tpu.memory_space<vmem>>, vector<4x8xf32>
    %cst_10 = arith.constant dense<0.000000e+00> : vector<16x8xf32>
    %11 = tpu.matmul %9, %10, %cst_10 {dimension_numbers = #tpu.dot_dimension_numbers<[1], [0], [0], [1], [0, 0, 1, 1], [], []>} : vector<16x4xf32>, vector<4x8xf32>, vector<16x8xf32> -> vector<16x8xf32>
    %12 = vector.extract_strided_slice %11 {offsets = [0, 0], sizes = [8, 8], strides = [1, 1]} : vector<16x8xf32> to vector<8x8xf32>
    %13 = vector.extract_strided_slice %11 {offsets = [8, 0], sizes = [8, 8], strides = [1, 1]} : vector<16x8xf32> to vector<8x8xf32>
    %14 = arith.addf %12, %13 : vector<8x8xf32>
    %15 = arith.negf %14 : vector<8x8xf32>
    %16 = math.exp %15 : vector<8x8xf32>
    %cst_11 = arith.constant 1.000000e+00 : f32
    %17 = vector.broadcast %cst_11 : f32 to vector<8x8xf32>
    %18 = arith.addf %17, %16 : vector<8x8xf32>
    %19 = arith.divf %17, %18 : vector<8x8xf32>
    %20 = vector.shape_cast %19 : vector<8x8xf32> to vector<8x8x1xf32>
    %21 = vector.broadcast %20 : vector<8x8x1xf32> to vector<8x8x16xf32>
    %22 = arith.mulf %21, %0 : vector<8x8x16xf32>
    %cst_12 = arith.constant dense<0.000000e+00> : vector<8x16xf32>
    %23 = vector.multi_reduction <add>, %22, %cst_12 [1] : vector<8x8x16xf32> to vector<8x16xf32>
    %c0_13 = arith.constant 0 : index
    %c0_14 = arith.constant 0 : index
    %24 = vector.load %arg4[%c0_13, %c0_14] : memref<16x128xf32, #tpu.memory_space<vmem>>, vector<16x128xf32>
    %cst_15 = arith.constant dense<0.000000e+00> : vector<8x128xf32>
    %25 = tpu.matmul %23, %24, %cst_15 {dimension_numbers = #tpu.dot_dimension_numbers<[1], [0], [0], [1], [0, 0, 1, 1], [], []>} : vector<8x16xf32>, vector<16x128xf32>, vector<8x128xf32> -> vector<8x128xf32>
    %c0_16 = arith.constant 0 : index
    %c0_17 = arith.constant 0 : index
    %26 = vector.load %arg5[%c0_16, %c0_17] : memref<1x128xf32, #tpu.memory_space<vmem>>, vector<1x128xf32>
    %27 = vector.broadcast %26 : vector<1x128xf32> to vector<8x128xf32>
    %28 = arith.addf %25, %27 : vector<8x128xf32>
    %cst_18 = arith.constant 5.000000e-01 : f32
    %29 = vector.broadcast %cst_18 : f32 to vector<8x128xf32>
    %30 = arith.mulf %29, %28 : vector<8x128xf32>
    %cst_19 = arith.constant 0.707106769 : f32
    %31 = vector.broadcast %cst_19 : f32 to vector<8x128xf32>
    %32 = arith.mulf %28, %31 : vector<8x128xf32>
    %33 = math.erf %32 : vector<8x128xf32>
    %cst_20 = arith.constant 1.000000e+00 : f32
    %34 = vector.broadcast %cst_20 : f32 to vector<8x128xf32>
    %35 = arith.addf %34, %33 : vector<8x128xf32>
    %36 = arith.mulf %30, %35 : vector<8x128xf32>
    %c0_21 = arith.constant 0 : index
    %c0_22 = arith.constant 0 : index
    %37 = vector.load %arg6[%c0_21, %c0_22] : memref<8x128xf32, #tpu.memory_space<vmem>>, vector<8x128xf32>
    tpu.vector_store %arg6[%c0_21, %c0_22], %36 {strides = array<i32>} : memref<8x128xf32, #tpu.memory_space<vmem>>, vector<8x128xf32>,
    return
  }
  func.func @transform_0(%arg0: i32) -> (i32, i32, i32) {
    %c0_i32 = arith.constant 0 : i32
    %c0_i32_0 = arith.constant 0 : i32
    %c0_i32_1 = arith.constant 0 : i32
    return %arg0, %c0_i32, %c0_i32_0 : i32, i32, i32
  }
  func.func @transform_1(%arg0: i32) -> (i32, i32) {
    %c0_i32 = arith.constant 0 : i32
    %c0_i32_0 = arith.constant 0 : i32
    %c0_i32_1 = arith.constant 0 : i32
    return %c0_i32, %c0_i32_0 : i32, i32
  }
  func.func @transform_2(%arg0: i32) -> (i32, i32) {
    %c0_i32 = arith.constant 0 : i32
    %c0_i32_0 = arith.constant 0 : i32
    %c0_i32_1 = arith.constant 0 : i32
    return %c0_i32, %c0_i32_0 : i32, i32
  }
  func.func @transform_3(%arg0: i32) -> (i32, i32) {
    %c0_i32 = arith.constant 0 : i32
    %c0_i32_0 = arith.constant 0 : i32
    %c0_i32_1 = arith.constant 0 : i32
    return %c0_i32, %c0_i32_0 : i32, i32
  }
  func.func @transform_4(%arg0: i32) -> (i32, i32) {
    %c0_i32 = arith.constant 0 : i32
    %c0_i32_0 = arith.constant 0 : i32
    %c0_i32_1 = arith.constant 0 : i32
    return %c0_i32, %c0_i32_0 : i32, i32
  }
  func.func @transform_5(%arg0: i32) -> (i32, i32) {
    %c0_i32 = arith.constant 0 : i32
    %c0_i32_0 = arith.constant 0 : i32
    return %arg0, %c0_i32 : i32, i32
  }
}

</mosaic_0001>

<bundles_post_ra>
// kernel: hommerge_pallas.1
= control target key start
LH: loop header
LB: loop body
LE: loop exit
PB: predicated region body
PF: predicated region fallthrough
CT: control target
= control target key end

     0   :  { %vm28_vm0 = vcmask 130048   ;;  %v94_v25 = vlaneseq  ;;  %vm128_vm1 = vcmask 1041409   ;;  %vm130_vm2 = vcmask 1042434   ;;  %s807_s0 = inlined_call_operand.vmem [shape: f32[8,8,16], index: 0, kind: input, shape index: {}]   ;;  %s808_s1 = inlined_call_operand.vmem [shape: f32[8,4], index: 1, kind: input, shape index: {}]   ;;  %s809_s2 = inlined_call_operand.vmem [shape: f32[4,8], index: 2, kind: input, shape index: {}]   ;;  %s810_s3 = inlined_call_operand.vmem [shape: f32[16,128], index: 3, kind: input, shape index: {}]   ;;  %s811_s4 = inlined_call_operand.vmem [shape: f32[1,128], index: 4, kind: input, shape index: {}]   ;;  %s812_s5 = inlined_call_operand.vmem [shape: f32[8,128], index: 5, kind: output, shape index: {}]  }
   0x1   :  { %v669_v0 = vld [vmem:[%s807_s0 + $0x10] sm:$0xff]  ;;  %v674_v1 = vld [vmem:[%s807_s0] sm:$0xff]  ;;  %v679_v2 = vld [vmem:[%s807_s0 + $0x18] sm:$0xff]  ;;  %vm132_vm3 = vcmask 1043459   ;;  %vm134_vm4 = vcmask 1044484   ;;  %vm136_vm5 = vcmask 1045509  }
   0x2   :  { %v35_v3 = vsel %vm28_vm0, %v669_v0, 0.0  ;;  %v29_v4 = vsel %vm28_vm0, %v674_v1, 0.0  ;;  %v688_v5 = vld [vmem:[%s807_s0 + $0x8] sm:$0xff]  ;;  %v38_v6 = vsel %vm28_vm0, %v679_v2, 0.0  ;;  %v697_v8 = vld [vmem:[%s807_s0 + $0x20] sm:$0xff]  ;;  %v62_v9 = vsel %vm28_vm0, %v674_v1, -inf }
   0x3   :  { %36 = vadd.xlane.f32.xlu1 %v35_v3  ;;  %30 = vadd.xlane.f32.xlu0 %v29_v4  ;;  %v32_v7 = vsel %vm28_vm0, %v688_v5, 0.0  ;;  %v41_v10 = vsel %vm28_vm0, %v697_v8, 0.0  ;;  %v706_v11 = vld [vmem:[%s807_s0 + $0x28] sm:$0xff]  ;;  %v65_v13 = vsel %vm28_vm0, %v688_v5, -inf  ;;  %v715_v14 = vld [vmem:[%s807_s0 + $0x30] sm:$0xff]  ;;  %v68_v16 = vsel %vm28_vm0, %v669_v0, -inf }
   0x4   :  { %v44_v12 = vsel %vm28_vm0, %v706_v11, 0.0  ;;  %v47_v15 = vsel %vm28_vm0, %v715_v14, 0.0  ;;  %v724_v17 = vld [vmem:[%s807_s0 + $0x38] sm:$0xff]  ;;  %v71_v19 = vsel %vm28_vm0, %v679_v2, -inf  ;;  %v74_v20 = vsel %vm28_vm0, %v697_v8, -inf  ;;  %v189_v24 = vld [vmem:[%s808_s1] sm:$0xff] }
   0x5   :  { %v50_v18 = vsel %vm28_vm0, %v724_v17, 0.0  ;;  %v77_v21 = vsel %vm28_vm0, %v706_v11, -inf  ;;  %v80_v22 = vsel %vm28_vm0, %v715_v14, -inf  ;;  %v83_v23 = vsel %vm28_vm0, %v724_v17, -inf  ;;  %609 = vmatprep.subr.mxu0 %v189_v24 }
   0x6   :  { %610 = vmatpush3.msra.mxu0 %v189_v24  ;;  %v95_v28 = vand.u32 127, %v94_v25  ;;  %v741_v29 = vshrl.u32 %v94_v25, 7  ;;  %vm138_vm6 = vcmask 1046534   ;;  %vm140_vm7 = vcmask 1047559  }
   0x7   :  { %39 = vadd.xlane.f32.xlu1 %v38_v6  ;;  %33 = vadd.xlane.f32.xlu0 %v32_v7  ;;  %vm190_vm8 = vcmask 64512   ;;  %vm280_vm9 = vcmask 1043456   ;;  %vm273_vm10 = vcmask 31744   ;;  %vm635_vm11 = vmmov 0  }
   0x8   :  { %v98_v33 = vsub.s32 %v95_v28, %v741_v29 }
   0xb   :  { %63 = vmax.xlane.f32.xlu1 %v62_v9  ;;  %42 = vadd.xlane.f32.xlu0 %v41_v10 }
   0xf   :  { %45 = vadd.xlane.f32.xlu1 %v44_v12  ;;  %66 = vmax.xlane.f32.xlu0 %v65_v13 }
  0x13   :  { %48 = vadd.xlane.f32.xlu1 %v47_v15  ;;  %69 = vmax.xlane.f32.xlu0 %v68_v16 }
  0x17   :  { %51 = vadd.xlane.f32.xlu1 %v50_v18  ;;  %72 = vmax.xlane.f32.xlu0 %v71_v19 }
  0x1b   :  { %75 = vmax.xlane.f32.xlu0 %v74_v20  ;;  %78 = vmax.xlane.f32.xlu1 %v77_v21 }
  0x1f   :  { %81 = vmax.xlane.f32.xlu0 %v80_v22  ;;  %84 = vmax.xlane.f32.xlu1 %v83_v23 }
  0x8c   :  { %v37_v26 = vpop.xlane.xlu1 %36  ;;  %v31_v27 = vpop.xlane.xlu0 %30 }
  0x8d   :  { %v54_v34 = vmul.f32 0.0625, %v31_v27  ;;  %v56_v38 = vmul.f32 0.0625, %v37_v26  ;;  %v272_v27 = vld [vmem:[%s809_s2] sm:$0xf] }
  0x8e   :  { %614 = vmatprep.subr.msk.mxu1 %vm280_vm9, %v272_v27 }
  0x8f   :  { %v99_v39 = vrot.slane %v54_v34, %v98_v33  ;;  %v107_v44 = vrot.slane %v56_v38, %v98_v33  ;;  %615 = vmatpush3.msk.msra.mxu1 %vm280_vm9, %v272_v27 }
  0x90   :  { %v40_v30 = vpop.xlane.xlu1 %39  ;;  %v34_v31 = vpop.xlane.xlu0 %33 }
  0x91   :  { %v55_v32 = vmul.f32 0.0625, %v34_v31  ;;  %v57_v40 = vmul.f32 0.0625, %v40_v30 }
  0x93   :  { %v103_v37 = vrot.slane %v55_v32, %v98_v33  ;;  %v111_v46 = vrot.slane %v57_v40, %v98_v33  ;;  %v368_v40 = vsub.s32 0, %v741_v29 }
  0x94   :  { %v64_v35 = vpop.xlane.xlu1 %63  ;;  %v43_v36 = vpop.xlane.xlu0 %42 }
  0x95   :  { %v129_v43 = vsel %vm128_vm1, %v103_v37, %v99_v39  ;;  %v58_v45 = vmul.f32 0.0625, %v43_v36  ;;  %v153_v61 = vrot.slane %v64_v35, %v98_v33  ;;  %v375_v39 = vsub.s32 1, %v741_v29 }
  0x96   :  { %v131_v48 = vsel %vm130_vm2, %v107_v44, %v129_v43  ;;  %v382_v44 = vsub.s32 2, %v741_v29 }
  0x97   :  { %v115_v52 = vrot.slane %v58_v45, %v98_v33  ;;  %v133_v53 = vsel %vm132_vm3, %v111_v46, %v131_v48  ;;  %v396_v45 = vsub.s32 4, %v741_v29  ;;  %v389_v48 = vsub.s32 3, %v741_v29 }
  0x98   :  { %v46_v41 = vpop.xlane.xlu1 %45  ;;  %v67_v42 = vpop.xlane.xlu0 %66 }
  0x99   :  { %v59_v47 = vmul.f32 0.0625, %v46_v41  ;;  %v157_v55 = vrot.slane %v67_v42, %v98_v33  ;;  %v135_v62 = vsel %vm134_vm4, %v115_v52, %v133_v53  ;;  %v403_v52 = vsub.s32 5, %v741_v29 }
  0x9b   :  { %v119_v54 = vrot.slane %v59_v47, %v98_v33  ;;  %v182_v6 = vsel %vm128_vm1, %v157_v55, %v153_v61 }
  0x9c   :  { %v49_v49 = vpop.xlane.xlu1 %48  ;;  %v70_v50 = vpop.xlane.xlu0 %69 }
  0x9d   :  { %v60_v51 = vmul.f32 0.0625, %v49_v49  ;;  %v161_v59 = vrot.slane %v70_v50, %v98_v33  ;;  %v137_v4 = vsel %vm136_vm5, %v119_v54, %v135_v62  ;;  %v410_v49 = vsub.s32 6, %v741_v29 }
  0x9e   :  { %v417_v54 = vsub.s32 7, %v741_v29 }
  0x9f   :  { %v123_v56 = vrot.slane %v60_v51, %v98_v33  ;;  %v183_v12 = vsel %vm130_vm2, %v161_v59, %v182_v6 }
  0xa0   :  { %v52_v57 = vpop.xlane.xlu1 %51  ;;  %v73_v58 = vpop.xlane.xlu0 %72 }
  0xa1   :  { %v61_v60 = vmul.f32 0.0625, %v52_v57  ;;  %v165_v63 = vrot.slane %v73_v58, %v98_v33  ;;  %v139_v10 = vsel %vm138_vm6, %v123_v56, %v137_v4  ;;  %v634_v56 = vmov 0.0   ;;  %v487_v57 = vld [vmem:[%s810_s3 + $0x8] sm:$0xff]  ;;  %v486_v58 = vld [vmem:[%s810_s3] sm:$0xff] }
  0xa2   :  { %619 = vmatprep.subr.mxu0 %v634_v56 }
  0xa3   :  { %v127_v3 = vrot.slane %v61_v60, %v98_v33  ;;  %v184_v16 = vsel %vm132_vm3, %v165_v63, %v183_v12 }
  0xa4   :  { %v76_v7 = vpop.xlane.xlu0 %75  ;;  %v79_v9 = vpop.xlane.xlu1 %78 }
  0xa5   :  { %v169_v13 = vrot.slane %v76_v7, %v98_v33  ;;  %v141_v15 = vsel %vm140_vm7, %v127_v3, %v139_v10  ;;  %v173_v18 = vrot.slane %v79_v9, %v98_v33 }
  0xa6   :  { %611 = vmatprep.mubr.msk.f32.mxu0 %vm190_vm8, %v141_v15 }
  0xa7   :  { %v185_v19 = vsel %vm134_vm4, %v169_v13, %v184_v16 }
  0xa8   :  { %v82_v20 = vpop.xlane.xlu0 %81  ;;  %v85_v21 = vpop.xlane.xlu1 %84  ;;  %v186_v24 = vsel %vm136_vm5, %v173_v18, %v185_v19 }
  0xa9   :  { %v177_v22 = vrot.slane %v82_v20, %v98_v33  ;;  %v181_v23 = vrot.slane %v85_v21, %v98_v33 }
  0xab   :  { %v187_v25 = vsel %vm138_vm6, %v177_v22, %v186_v24 }
  0xac   :  { %v188_v26 = vsel %vm140_vm7, %v181_v23, %v187_v25 }
  0xad   :  { %612 = vmatmul.mubr.msk.f32.vlgmr.msra.gmra.mxu0 %vm190_vm8, %v188_v26 }
  0xae   :  { %620 = vmatpush3.msra.mxu0 %v487_v57  ;;  %623 = vmatprep.mubr.msk.f32.mxu0 %vm635_vm11, %v634_v56 }
  0xaf   :  { %621 = vmatprep.subr.mxu0 %v634_v56 }
  0xb0   :  { %622 = vmatpush3.msra.mxu0 %v486_v58 }
 0x16d   :  { %v613_v28 = vpop.f32.mrf.mxu0 }
 0x16e   :  { %v271_v32 = vmax.f32 %v613_v28, 0.0 }
 0x16f   :  { %v261_v30 = vpop.f32.mrf.mxu0 }
 0x170   :  { %v270_v31 = vmax.f32 %v261_v30, 0.0 }
 0x172   :  { %616 = vmatprep.mubr.msk.f32.mxu1 %vm273_vm10, %v270_v31 }
 0x173   :  { %617 = vmatmul.mubr.msk.f32.vlgmr.msra.gmra.mxu1 %vm273_vm10, %v271_v32 }
 0x233   :  { %v618_v33 = vpop.f32.mrf.mxu1 }
 0x235   :  { %v350_v34 = vpop.f32.mrf.mxu1 }
 0x236   :  { %v359_v35 = vadd.f32 %v618_v33, %v350_v34 }
 0x238   :  { %v597_v36 = vmul.f32 -1.442695, %v359_v35 }
 0x23a   :  { %628 = vpow2.f32 %v597_v36 }
 0x247   :  { %v629_v37 = vpop.eup %628 }
 0x248   :  { %v363_v38 = vadd.f32 1.0, %v629_v37 }
 0x24a   :  { %630 = vrcp.f32 %v363_v38 }
 0x257   :  { %v631_v41 = vpop.eup %630 }
 0x258   :  { %v376_v42 = vrot.slane %v631_v41, %v375_v39  ;;  %v369_v43 = vrot.slane %v631_v41, %v368_v40  ;;  %v383_v46 = vrot.slane %v631_v41, %v382_v44  ;;  %v397_v47 = vrot.slane %v631_v41, %v396_v45 }
 0x259   :  { %v390_v50 = vrot.slane %v631_v41, %v389_v48  ;;  %v411_v51 = vrot.slane %v631_v41, %v410_v49  ;;  %v404_v53 = vrot.slane %v631_v41, %v403_v52  ;;  %v418_v55 = vrot.slane %v631_v41, %v417_v54 }
 0x25a   :  { %378 = vbcast.lane.b32.xlu1 %v376_v42, 256  ;;  %371 = vbcast.lane.b32.xlu0 %v369_v43, 256 }
 0x25e   :  { %385 = vbcast.lane.b32.xlu1 %v383_v46, 256  ;;  %399 = vbcast.lane.b32.xlu0 %v397_v47, 256 }
 0x262   :  { %392 = vbcast.lane.b32.xlu1 %v390_v50, 256  ;;  %413 = vbcast.lane.b32.xlu0 %v411_v51, 256 }
 0x266   :  { %406 = vbcast.lane.b32.xlu1 %v404_v53, 256 }
 0x26a   :  { %420 = vbcast.lane.b32.xlu1 %v418_v55, 256 }
 0x2cc   :  { %v379_v59 = vpop.permute.xlu1 %378  ;;  %v372_v29 = vpop.permute.xlu0 %371 }
 0x2cd   :  { %v423_v60 = vmul.f32 %v379_v59, %v688_v5  ;;  %v422_v61 = vmul.f32 %v372_v29, %v674_v1 }
 0x2cf   :  { %v437_v62 = vsel %vm28_vm0, %v423_v60, 0.0  ;;  %v430_v63 = vsel %vm28_vm0, %v422_v61, 0.0 }
 0x2d0   :  { %v438_v3 = vrot.slane %v437_v62, 4  ;;  %v431_v4 = vrot.slane %v430_v63, 4  ;;  %v386_v6 = vpop.permute.xlu1 %385  ;;  %v400_v7 = vpop.permute.xlu0 %399 }
 0x2d1   :  { %v424_v9 = vmul.f32 %v386_v6, %v669_v0  ;;  %v426_v10 = vmul.f32 %v400_v7, %v697_v8 }
 0x2d2   :  { %v439_v12 = vadd.f32 %v438_v3, %v437_v62  ;;  %v432_v13 = vadd.f32 %v431_v4, %v430_v63 }
 0x2d3   :  { %v444_v15 = vsel %vm28_vm0, %v424_v9, 0.0  ;;  %v458_v5 = vsel %vm28_vm0, %v426_v10, 0.0 }
 0x2d4   :  { %v440_v16 = vrot.slane %v439_v12, 2  ;;  %v433_v1 = vrot.slane %v432_v13, 2  ;;  %v445_v18 = vrot.slane %v444_v15, 4  ;;  %v459_v19 = vrot.slane %v458_v5, 4  ;;  %v393_v20 = vpop.permute.xlu1 %392  ;;  %v414_v21 = vpop.permute.xlu0 %413 }
 0x2d5   :  { %v425_v22 = vmul.f32 %v393_v20, %v679_v2  ;;  %v428_v23 = vmul.f32 %v414_v21, %v715_v14 }
 0x2d6   :  { %v441_v24 = vadd.f32 %v440_v16, %v439_v12  ;;  %v446_v0 = vadd.f32 %v445_v18, %v444_v15  ;;  %v460_v25 = vadd.f32 %v459_v19, %v458_v5  ;;  %v434_v8 = vadd.f32 %v433_v1, %v432_v13  ;;  %v598_v5 = vld [vmem:[%s811_s4] ss:$0 sm:$0xff] }
 0x2d7   :  { %v451_v26 = vsel %vm28_vm0, %v425_v22, 0.0  ;;  %v472_v27 = vsel %vm28_vm0, %v428_v23, 0.0 }
 0x2d8   :  { %v447_v28 = vrot.slane %v446_v0, 2  ;;  %v407_v30 = vpop.permute.xlu1 %406  ;;  %v461_v31 = vrot.slane %v460_v25, 2  ;;  %v452_v32 = vrot.slane %v451_v26, 4  ;;  %v473_v33 = vrot.slane %v472_v27, 4 }
 0x2d9   :  { %v427_v34 = vmul.f32 %v407_v30, %v706_v11  ;;  %v442_v35 = vrot.slane %v441_v24, 1  ;;  %v435_v2 = vrot.slane %v434_v8, 1 }
 0x2da   :  { %v448_v36 = vadd.f32 %v447_v28, %v446_v0  ;;  %v453_v37 = vadd.f32 %v452_v32, %v451_v26  ;;  %v474_v14 = vadd.f32 %v473_v33, %v472_v27  ;;  %v462_v42 = vadd.f32 %v461_v31, %v460_v25 }
 0x2db   :  { %v465_v38 = vsel %vm28_vm0, %v427_v34, 0.0  ;;  %v443_v47 = vadd.f32 %v442_v35, %v441_v24  ;;  %v436_v48 = vadd.f32 %v435_v2, %v434_v8 }
 0x2dc   :  { %v449_v39 = vrot.slane %v448_v36, 1  ;;  %v466_v40 = vrot.slane %v465_v38, 4  ;;  %v421_v41 = vpop.permute.xlu1 %420  ;;  %v454_v43 = vrot.slane %v453_v37, 2  ;;  %v475_v44 = vrot.slane %v474_v14, 2 }
 0x2dd   :  { %v429_v45 = vmul.f32 %v421_v41, %v724_v17  ;;  %v463_v53 = vrot.slane %v462_v42, 1  ;;  %v503_v58 = vsel %vm128_vm1, %v443_v47, %v436_v48 }
 0x2de   :  { %v467_v46 = vadd.f32 %v466_v40, %v465_v38  ;;  %v455_v49 = vadd.f32 %v454_v43, %v453_v37  ;;  %v450_v50 = vadd.f32 %v449_v39, %v448_v36  ;;  %v476_v55 = vadd.f32 %v475_v44, %v474_v14 }
 0x2df   :  { %v479_v11 = vsel %vm28_vm0, %v429_v45, 0.0  ;;  %v464_v61 = vadd.f32 %v463_v53, %v462_v42 }
 0x2e0   :  { %v468_v51 = vrot.slane %v467_v46, 2  ;;  %v480_v52 = vrot.slane %v479_v11, 4  ;;  %v456_v54 = vrot.slane %v455_v49, 1  ;;  %v504_v29 = vsel %vm130_vm2, %v450_v50, %v503_v58 }
 0x2e1   :  { %v477_v63 = vrot.slane %v476_v55, 1 }
 0x2e2   :  { %v469_v56 = vadd.f32 %v468_v51, %v467_v46  ;;  %v481_v57 = vadd.f32 %v480_v52, %v479_v11  ;;  %v457_v59 = vadd.f32 %v456_v54, %v455_v49 }
 0x2e3   :  { %v478_v10 = vadd.f32 %v477_v63, %v476_v55 }
 0x2e4   :  { %v470_v17 = vrot.slane %v469_v56, 1  ;;  %v482_v60 = vrot.slane %v481_v57, 2  ;;  %v505_v62 = vsel %vm132_vm3, %v457_v59, %v504_v29 }
 0x2e5   :  { %v506_v6 = vsel %vm134_vm4, %v464_v61, %v505_v62 }
 0x2e6   :  { %v471_v3 = vadd.f32 %v470_v17, %v469_v56  ;;  %v483_v4 = vadd.f32 %v482_v60, %v481_v57 }
 0x2e8   :  { %v484_v7 = vrot.slane %v483_v4, 1  ;;  %v507_v9 = vsel %vm136_vm5, %v471_v3, %v506_v6 }
 0x2e9   :  { %v508_v13 = vsel %vm138_vm6, %v478_v10, %v507_v9 }
 0x2ea   :  { %v485_v12 = vadd.f32 %v484_v7, %v483_v4 }
 0x2ec   :  { %v509_v15 = vsel %vm140_vm7, %v485_v12, %v508_v13 }
 0x2ed   :  { %624 = vmatmul.mubr.msk.f32.vlgmr.msra.gmra.mxu0 %vm28_vm0, %v509_v15 }
 0x3ad   :  { %v578_v16 = vpop.f32.mrf.mxu0 }
 0x3ae   :  { %v579_v1 = vadd.f32 %v598_v5, %v578_v16 }
 0x3af   :  { %v625_v18 = vpop.f32.mrf.mxu0 }
 0x3b0   :  { %v583_v19 = vmul.f32 0.70710677, %v579_v1  ;;  %v582_v21 = vmul.f32 0.5, %v579_v1 }
 0x3b2   :  { %632 = verf.f32 %v583_v19 }
 0x3bf   :  { %v633_v20 = vpop.eup %632 }
 0x3c0   :  { %v585_v22 = vadd.f32 1.0, %v633_v20 }
 0x3c2   :  { %v586_v23 = vmul.f32 %v585_v22, %v582_v21 }
 0x3c4   :  { %587 = vst [vmem:[%s812_s5] sm:$0xff] %v586_v23 }

</bundles_post_ra>
